<compile_context>
chip_gen: v5e
topology: v5e:2x2
jax: 0.10.0
libtpu: 0.0.40
codegen_flags: <defaults>
</compile_context>

<pallas_src>
import functools

import jax
import jax.numpy as jnp
from jax.experimental import pallas as pl
from jax.experimental.pallas import tpu as pltpu


def _round_up(x, m):
    return (x + m - 1) // m * m


def _cross_taps(radius):
    taps = [(0, dx) for dx in range(-radius, radius + 1)]
    taps += [(dy, 0) for dy in range(-radius, radius + 1) if dy != 0]
    return tuple(taps)


# ---------------------------------------------------------------------------
# Fold the 7 centered convs + mean into one cross-shaped stencil.
# ---------------------------------------------------------------------------
def fuse_inception_params(params):
    """Returns (w_fused (T, Cout, Cin), b_fused (Cout,), taps, radius)."""
    n_branch = len(params)
    cout, cin = params[0][0].shape[:2]
    radius = max((max(int(w.shape[2]), int(w.shape[3])) - 1) // 2
                 for (w, _) in params)
    taps = _cross_taps(radius)

    per_tap = {t: [] for t in taps}
    for (w, b) in params:
        kh, kw = int(w.shape[2]), int(w.shape[3])
        ph, pw = (kh - 1) // 2, (kw - 1) // 2
        for r in range(kh):
            for c in range(kw):
                per_tap[(r - ph, c - pw)].append(w[:, :, r, c])

    w_fused = jnp.stack(
        [sum(per_tap[t]) if per_tap[t]
         else jnp.zeros((cout, cin), jnp.float32) for t in taps],
        axis=0) / n_branch                                  # (T, Cout, Cin)
    b_fused = sum(b for (_, b) in params) / n_branch        # (Cout,)
    return w_fused, b_fused, taps, radius


# ---------------------------------------------------------------------------
# Pallas kernel: fused cross-conv; tap views built in VMEM, 13 MXU dots.
# ---------------------------------------------------------------------------
def _inception_kernel(x_ref, w_ref, b_ref, o_ref, *,
                      taps, row_stride, radius, batch_block):
    """x_ref: (batch_block, Cin, L_in)  bf16  flattened zero-padded images
       w_ref: (n_taps, Cout, Cin)       bf16  fused (mean) per-tap weights
       b_ref: (Cout, 1)                 f32   fused (mean) bias
       o_ref: (batch_block, Cout, L_out)      flat padded-row output slab
    """
    l_out = o_ref.shape[-1]
    bias = b_ref[...]                                        # (Cout, 1) f32
    for b in range(batch_block):                             # static loop
        xb = x_ref[b]                                        # (Cin, L_in)
        acc = None
        for t, (dy, dx) in enumerate(taps):
            # output flat index m (padded coords) reads input at m + off.
            off = (radius + dy) * row_stride + (radius + dx)  # static int
            view = xb[:, off:off + l_out]                     # (Cin, L_out)
            part = jax.lax.dot_general(                       # depth-Cin dot
                w_ref[t], view,
                dimension_numbers=(((1,), (0,)), ((), ())),
                preferred_element_type=jnp.float32)           # (Cout, L_out)
            acc = part if acc is None else acc + part
        o_ref[b] = (acc + bias).astype(o_ref.dtype)


# ---------------------------------------------------------------------------
# Wrapper: pad + flatten input (cheap, fusible), launch one pallas_call.
# ---------------------------------------------------------------------------
def inception_block_v2_forward(x_nchw, params, *, batch_block=1,
                               compute_dtype=jnp.bfloat16):
    """Forward of Inception_Block_V2 (mean of all conv branches), NCHW."""
    n, cin, h, w = x_nchw.shape
    w_fused, b_fused, taps, radius = fuse_inception_params(params)
    n_taps, cout, _ = w_fused.shape

    hp, wp = h + 2 * radius, w + 2 * radius
    # Lane-dense output slab: H rows of stride Wp, rounded up to 128 lanes.
    l_out = _round_up(h * wp, 128)
    # Flat padded input length must cover the largest tap offset + slab.
    max_off = 2 * radius * wp + 2 * radius
    l_in = _round_up(max(hp * wp, max_off + l_out), 128)

    n_pad = _round_up(n, batch_block)

    xpad = jnp.pad(x_nchw, ((0, n_pad - n), (0, 0),
                            (radius, radius), (radius, radius)))
    xflat = xpad.reshape(n_pad, cin, hp * wp)
    xflat = jnp.pad(xflat, ((0, 0), (0, 0), (0, l_in - hp * wp)))
    xflat = xflat.astype(compute_dtype)                      # halve DMA bytes
    wq = w_fused.astype(compute_dtype)
    b2 = b_fused.reshape(cout, 1).astype(jnp.float32)

    kernel = functools.partial(
        _inception_kernel, taps=taps, row_stride=wp,
        radius=radius, batch_block=batch_block)

    out_flat = pl.pallas_call(
        kernel,
        out_shape=jax.ShapeDtypeStruct((n_pad, cout, l_out), x_nchw.dtype),
        grid=(n_pad // batch_block,),
        in_specs=[
            pl.BlockSpec((batch_block, cin, l_in), lambda i: (i, 0, 0)),
            pl.BlockSpec((n_taps, cout, cin), lambda i: (0, 0, 0)),
            pl.BlockSpec((cout, 1), lambda i: (0, 0)),
        ],
        out_specs=pl.BlockSpec((batch_block, cout, l_out),
                               lambda i: (i, 0, 0)),
        compiler_params=pltpu.CompilerParams(
            dimension_semantics=("parallel",),       # v7x: 2 TCs split batch
            allow_input_fusion=[True, False, False],  # fuse pad/reshape in
        ),
    )(xflat, wq, b2)

    # Slice valid pixels back out.  A downstream fused consumer could keep
    # the padded (N, Cout, l_out) slab and skip this copy.
    out = out_flat[:n, :, :h * wp].reshape(n, cout, h, wp)[..., :w]
    return out


# ---------------------------------------------------------------------------
# Parameter init mirroring the module (kaiming_normal_ fan_out relu, bias=0).
# ---------------------------------------------------------------------------
def make_params(key, in_channels, out_channels, num_kernels=6):
    kernel_sizes = []
    for i in range(num_kernels // 2):
        kernel_sizes.append((1, 2 * i + 3))
        kernel_sizes.append((2 * i + 3, 1))
    kernel_sizes.append((1, 1))

    params = []
    for (kh, kw) in kernel_sizes:
        key, sub = jax.random.split(key)
        fan_out = out_channels * kh * kw
        std = (2.0 / fan_out) ** 0.5
        w = std * jax.random.normal(
            sub, (out_channels, in_channels, kh, kw), jnp.float32)
        b = jnp.zeros((out_channels,), jnp.float32)
        params.append((w, b))
    return params


# ---------------------------------------------------------------------------
# Pure-JAX reference (branch-by-branch, then mean) for numerical validation.
# ---------------------------------------------------------------------------
def _ref_forward(x_nchw, params):
    outs = []
    for (w, b) in params:
        kh, kw = w.shape[2], w.shape[3]
        ph, pw = (kh - 1) // 2, (kw - 1) // 2
        y = jax.lax.conv_general_dilated(
            x_nchw, w, window_strides=(1, 1),
            padding=[(ph, ph), (pw, pw)],
            dimension_numbers=("NCHW", "OIHW", "NCHW"))
        outs.append(y + b[None, :, None, None])
    return jnp.mean(jnp.stack(outs, axis=-1), axis=-1)


if __name__ == "__main__":
    key = jax.random.PRNGKey(0)
    k_x, k_p = jax.random.split(key)

    N, Cin, H, W = 2, 4, 16, 16
    Cout = 8
    num_kernels = 6

    x = jax.random.normal(k_x, (N, Cin, H, W), jnp.float32)
    params = make_params(k_p, Cin, Cout, num_kernels=num_kernels)

    fwd = jax.jit(inception_block_v2_forward)
    out = jax.block_until_ready(fwd(x, params))

    assert out.shape == (N, Cout, H, W), out.shape

    ref = _ref_forward(x, params)
    max_err = float(jnp.max(jnp.abs(out - ref)))
    # bf16 inputs/weights with f32 accumulation -> loosened tolerance.
    assert jnp.allclose(out, ref, atol=2e-2, rtol=2e-2), \
        f"mismatch vs reference (max abs err {max_err})"

    print("KERNEL_OK")
</pallas_src>

<mosaic_0001>
module attributes {stable_mosaic.version = 11 : i64} {
  func.func @_inception_kernel(%arg0: i32, %arg1: memref<1x4x640xbf16, #tpu.memory_space<vmem>>, %arg2: memref<13x8x4xbf16, #tpu.memory_space<vmem>>, %arg3: memref<8x1xf32, #tpu.memory_space<vmem>>, %arg4: memref<1x8x384xf32, #tpu.memory_space<vmem>>) attributes {dimension_semantics = [#tpu.dimension_semantics<parallel>], iteration_bounds = array<i64: 2>, scalar_prefetch = 0 : i64, scratch_operands = 0 : i64, tpu.core_type = #tpu.core_type<tc>, window_params = [{transform_indices = @transform_0, window_bounds = array<i64: 1, 4, 640>}, {pipeline_mode = #tpu.pipeline_mode<synchronous>, transform_indices = @transform_1, window_bounds = array<i64: 13, 8, 4>}, {pipeline_mode = #tpu.pipeline_mode<synchronous>, transform_indices = @transform_2, window_bounds = array<i64: 8, 1>}, {transform_indices = @transform_3, window_bounds = array<i64: 1, 8, 384>}]} {
    %c0 = arith.constant 0 : index
    %c0_0 = arith.constant 0 : index
    %0 = vector.load %arg3[%c0, %c0_0] : memref<8x1xf32, #tpu.memory_space<vmem>>, vector<8x1xf32>
    %c0_1 = arith.constant 0 : index
    %c0_2 = arith.constant 0 : index
    %c0_3 = arith.constant 0 : index
    %1 = vector.load %arg1[%c0_1, %c0_2, %c0_3] : memref<1x4x640xbf16, #tpu.memory_space<vmem>>, vector<1x4x640xbf16>
    %2 = vector.shape_cast %1 : vector<1x4x640xbf16> to vector<4x640xbf16>
    %3 = vector.extract_strided_slice %2 {offsets = [0, 66], sizes = [4, 384], strides = [1, 1]} : vector<4x640xbf16> to vector<4x384xbf16>
    %c0_4 = arith.constant 0 : index
    %c0_5 = arith.constant 0 : index
    %c0_6 = arith.constant 0 : index
    %4 = vector.load %arg2[%c0_4, %c0_5, %c0_6] : memref<13x8x4xbf16, #tpu.memory_space<vmem>>, vector<1x8x4xbf16>
    %5 = vector.shape_cast %4 : vector<1x8x4xbf16> to vector<8x4xbf16>
    %cst = arith.constant dense<0.000000e+00> : vector<8x384xf32>
    %6 = tpu.matmul %5, %3, %cst {dimension_numbers = #tpu.dot_dimension_numbers<[1], [0], [0], [1], [0, 0, 1, 1], [], []>} : vector<8x4xbf16>, vector<4x384xbf16>, vector<8x384xf32> -> vector<8x384xf32>
    %7 = vector.extract_strided_slice %2 {offsets = [0, 67], sizes = [4, 384], strides = [1, 1]} : vector<4x640xbf16> to vector<4x384xbf16>
    %c1 = arith.constant 1 : index
    %c0_7 = arith.constant 0 : index
    %c0_8 = arith.constant 0 : index
    %8 = vector.load %arg2[%c1, %c0_7, %c0_8] : memref<13x8x4xbf16, #tpu.memory_space<vmem>>, vector<1x8x4xbf16>
    %9 = vector.shape_cast %8 : vector<1x8x4xbf16> to vector<8x4xbf16>
    %cst_9 = arith.constant dense<0.000000e+00> : vector<8x384xf32>
    %10 = tpu.matmul %9, %7, %cst_9 {dimension_numbers = #tpu.dot_dimension_numbers<[1], [0], [0], [1], [0, 0, 1, 1], [], []>} : vector<8x4xbf16>, vector<4x384xbf16>, vector<8x384xf32> -> vector<8x384xf32>
    %11 = arith.addf %6, %10 : vector<8x384xf32>
    %12 = vector.extract_strided_slice %2 {offsets = [0, 68], sizes = [4, 384], strides = [1, 1]} : vector<4x640xbf16> to vector<4x384xbf16>
    %c2 = arith.constant 2 : index
    %c0_10 = arith.constant 0 : index
    %c0_11 = arith.constant 0 : index
    %13 = vector.load %arg2[%c2, %c0_10, %c0_11] : memref<13x8x4xbf16, #tpu.memory_space<vmem>>, vector<1x8x4xbf16>
    %14 = vector.shape_cast %13 : vector<1x8x4xbf16> to vector<8x4xbf16>
    %cst_12 = arith.constant dense<0.000000e+00> : vector<8x384xf32>
    %15 = tpu.matmul %14, %12, %cst_12 {dimension_numbers = #tpu.dot_dimension_numbers<[1], [0], [0], [1], [0, 0, 1, 1], [], []>} : vector<8x4xbf16>, vector<4x384xbf16>, vector<8x384xf32> -> vector<8x384xf32>
    %16 = arith.addf %11, %15 : vector<8x384xf32>
    %17 = vector.extract_strided_slice %2 {offsets = [0, 69], sizes = [4, 384], strides = [1, 1]} : vector<4x640xbf16> to vector<4x384xbf16>
    %c3 = arith.constant 3 : index
    %c0_13 = arith.constant 0 : index
    %c0_14 = arith.constant 0 : index
    %18 = vector.load %arg2[%c3, %c0_13, %c0_14] : memref<13x8x4xbf16, #tpu.memory_space<vmem>>, vector<1x8x4xbf16>
    %19 = vector.shape_cast %18 : vector<1x8x4xbf16> to vector<8x4xbf16>
    %cst_15 = arith.constant dense<0.000000e+00> : vector<8x384xf32>
    %20 = tpu.matmul %19, %17, %cst_15 {dimension_numbers = #tpu.dot_dimension_numbers<[1], [0], [0], [1], [0, 0, 1, 1], [], []>} : vector<8x4xbf16>, vector<4x384xbf16>, vector<8x384xf32> -> vector<8x384xf32>
    %21 = arith.addf %16, %20 : vector<8x384xf32>
    %22 = vector.extract_strided_slice %2 {offsets = [0, 70], sizes = [4, 384], strides = [1, 1]} : vector<4x640xbf16> to vector<4x384xbf16>
    %c4 = arith.constant 4 : index
    %c0_16 = arith.constant 0 : index
    %c0_17 = arith.constant 0 : index
    %23 = vector.load %arg2[%c4, %c0_16, %c0_17] : memref<13x8x4xbf16, #tpu.memory_space<vmem>>, vector<1x8x4xbf16>
    %24 = vector.shape_cast %23 : vector<1x8x4xbf16> to vector<8x4xbf16>
    %cst_18 = arith.constant dense<0.000000e+00> : vector<8x384xf32>
    %25 = tpu.matmul %24, %22, %cst_18 {dimension_numbers = #tpu.dot_dimension_numbers<[1], [0], [0], [1], [0, 0, 1, 1], [], []>} : vector<8x4xbf16>, vector<4x384xbf16>, vector<8x384xf32> -> vector<8x384xf32>
    %26 = arith.addf %21, %25 : vector<8x384xf32>
    %27 = vector.extract_strided_slice %2 {offsets = [0, 71], sizes = [4, 384], strides = [1, 1]} : vector<4x640xbf16> to vector<4x384xbf16>
    %c5 = arith.constant 5 : index
    %c0_19 = arith.constant 0 : index
    %c0_20 = arith.constant 0 : index
    %28 = vector.load %arg2[%c5, %c0_19, %c0_20] : memref<13x8x4xbf16, #tpu.memory_space<vmem>>, vector<1x8x4xbf16>
    %29 = vector.shape_cast %28 : vector<1x8x4xbf16> to vector<8x4xbf16>
    %cst_21 = arith.constant dense<0.000000e+00> : vector<8x384xf32>
    %30 = tpu.matmul %29, %27, %cst_21 {dimension_numbers = #tpu.dot_dimension_numbers<[1], [0], [0], [1], [0, 0, 1, 1], [], []>} : vector<8x4xbf16>, vector<4x384xbf16>, vector<8x384xf32> -> vector<8x384xf32>
    %31 = arith.addf %26, %30 : vector<8x384xf32>
    %32 = vector.extract_strided_slice %2 {offsets = [0, 72], sizes = [4, 384], strides = [1, 1]} : vector<4x640xbf16> to vector<4x384xbf16>
    %c6 = arith.constant 6 : index
    %c0_22 = arith.constant 0 : index
    %c0_23 = arith.constant 0 : index
    %33 = vector.load %arg2[%c6, %c0_22, %c0_23] : memref<13x8x4xbf16, #tpu.memory_space<vmem>>, vector<1x8x4xbf16>
    %34 = vector.shape_cast %33 : vector<1x8x4xbf16> to vector<8x4xbf16>
    %cst_24 = arith.constant dense<0.000000e+00> : vector<8x384xf32>
    %35 = tpu.matmul %34, %32, %cst_24 {dimension_numbers = #tpu.dot_dimension_numbers<[1], [0], [0], [1], [0, 0, 1, 1], [], []>} : vector<8x4xbf16>, vector<4x384xbf16>, vector<8x384xf32> -> vector<8x384xf32>
    %36 = arith.addf %31, %35 : vector<8x384xf32>
    %37 = vector.extract_strided_slice %2 {offsets = [0, 3], sizes = [4, 384], strides = [1, 1]} : vector<4x640xbf16> to vector<4x384xbf16>
    %c7 = arith.constant 7 : index
    %c0_25 = arith.constant 0 : index
    %c0_26 = arith.constant 0 : index
    %38 = vector.load %arg2[%c7, %c0_25, %c0_26] : memref<13x8x4xbf16, #tpu.memory_space<vmem>>, vector<1x8x4xbf16>
    %39 = vector.shape_cast %38 : vector<1x8x4xbf16> to vector<8x4xbf16>
    %cst_27 = arith.constant dense<0.000000e+00> : vector<8x384xf32>
    %40 = tpu.matmul %39, %37, %cst_27 {dimension_numbers = #tpu.dot_dimension_numbers<[1], [0], [0], [1], [0, 0, 1, 1], [], []>} : vector<8x4xbf16>, vector<4x384xbf16>, vector<8x384xf32> -> vector<8x384xf32>
    %41 = arith.addf %36, %40 : vector<8x384xf32>
    %42 = vector.extract_strided_slice %2 {offsets = [0, 25], sizes = [4, 384], strides = [1, 1]} : vector<4x640xbf16> to vector<4x384xbf16>
    %c8 = arith.constant 8 : index
    %c0_28 = arith.constant 0 : index
    %c0_29 = arith.constant 0 : index
    %43 = vector.load %arg2[%c8, %c0_28, %c0_29] : memref<13x8x4xbf16, #tpu.memory_space<vmem>>, vector<1x8x4xbf16>
    %44 = vector.shape_cast %43 : vector<1x8x4xbf16> to vector<8x4xbf16>
    %cst_30 = arith.constant dense<0.000000e+00> : vector<8x384xf32>
    %45 = tpu.matmul %44, %42, %cst_30 {dimension_numbers = #tpu.dot_dimension_numbers<[1], [0], [0], [1], [0, 0, 1, 1], [], []>} : vector<8x4xbf16>, vector<4x384xbf16>, vector<8x384xf32> -> vector<8x384xf32>
    %46 = arith.addf %41, %45 : vector<8x384xf32>
    %47 = vector.extract_strided_slice %2 {offsets = [0, 47], sizes = [4, 384], strides = [1, 1]} : vector<4x640xbf16> to vector<4x384xbf16>
    %c9 = arith.constant 9 : index
    %c0_31 = arith.constant 0 : index
    %c0_32 = arith.constant 0 : index
    %48 = vector.load %arg2[%c9, %c0_31, %c0_32] : memref<13x8x4xbf16, #tpu.memory_space<vmem>>, vector<1x8x4xbf16>
    %49 = vector.shape_cast %48 : vector<1x8x4xbf16> to vector<8x4xbf16>
    %cst_33 = arith.constant dense<0.000000e+00> : vector<8x384xf32>
    %50 = tpu.matmul %49, %47, %cst_33 {dimension_numbers = #tpu.dot_dimension_numbers<[1], [0], [0], [1], [0, 0, 1, 1], [], []>} : vector<8x4xbf16>, vector<4x384xbf16>, vector<8x384xf32> -> vector<8x384xf32>
    %51 = arith.addf %46, %50 : vector<8x384xf32>
    %52 = vector.extract_strided_slice %2 {offsets = [0, 91], sizes = [4, 384], strides = [1, 1]} : vector<4x640xbf16> to vector<4x384xbf16>
    %c10 = arith.constant 10 : index
    %c0_34 = arith.constant 0 : index
    %c0_35 = arith.constant 0 : index
    %53 = vector.load %arg2[%c10, %c0_34, %c0_35] : memref<13x8x4xbf16, #tpu.memory_space<vmem>>, vector<1x8x4xbf16>
    %54 = vector.shape_cast %53 : vector<1x8x4xbf16> to vector<8x4xbf16>
    %cst_36 = arith.constant dense<0.000000e+00> : vector<8x384xf32>
    %55 = tpu.matmul %54, %52, %cst_36 {dimension_numbers = #tpu.dot_dimension_numbers<[1], [0], [0], [1], [0, 0, 1, 1], [], []>} : vector<8x4xbf16>, vector<4x384xbf16>, vector<8x384xf32> -> vector<8x384xf32>
    %56 = arith.addf %51, %55 : vector<8x384xf32>
    %57 = vector.extract_strided_slice %2 {offsets = [0, 113], sizes = [4, 384], strides = [1, 1]} : vector<4x640xbf16> to vector<4x384xbf16>
    %c11 = arith.constant 11 : index
    %c0_37 = arith.constant 0 : index
    %c0_38 = arith.constant 0 : index
    %58 = vector.load %arg2[%c11, %c0_37, %c0_38] : memref<13x8x4xbf16, #tpu.memory_space<vmem>>, vector<1x8x4xbf16>
    %59 = vector.shape_cast %58 : vector<1x8x4xbf16> to vector<8x4xbf16>
    %cst_39 = arith.constant dense<0.000000e+00> : vector<8x384xf32>
    %60 = tpu.matmul %59, %57, %cst_39 {dimension_numbers = #tpu.dot_dimension_numbers<[1], [0], [0], [1], [0, 0, 1, 1], [], []>} : vector<8x4xbf16>, vector<4x384xbf16>, vector<8x384xf32> -> vector<8x384xf32>
    %61 = arith.addf %56, %60 : vector<8x384xf32>
    %62 = vector.extract_strided_slice %2 {offsets = [0, 135], sizes = [4, 384], strides = [1, 1]} : vector<4x640xbf16> to vector<4x384xbf16>
    %c12 = arith.constant 12 : index
    %c0_40 = arith.constant 0 : index
    %c0_41 = arith.constant 0 : index
    %63 = vector.load %arg2[%c12, %c0_40, %c0_41] : memref<13x8x4xbf16, #tpu.memory_space<vmem>>, vector<1x8x4xbf16>
    %64 = vector.shape_cast %63 : vector<1x8x4xbf16> to vector<8x4xbf16>
    %cst_42 = arith.constant dense<0.000000e+00> : vector<8x384xf32>
    %65 = tpu.matmul %64, %62, %cst_42 {dimension_numbers = #tpu.dot_dimension_numbers<[1], [0], [0], [1], [0, 0, 1, 1], [], []>} : vector<8x4xbf16>, vector<4x384xbf16>, vector<8x384xf32> -> vector<8x384xf32>
    %66 = arith.addf %61, %65 : vector<8x384xf32>
    %67 = vector.broadcast %0 : vector<8x1xf32> to vector<8x384xf32>
    %68 = arith.addf %66, %67 : vector<8x384xf32>
    %c0_43 = arith.constant 0 : index
    %c0_44 = arith.constant 0 : index
    %c0_45 = arith.constant 0 : index
    %69 = vector.load %arg4[%c0_43, %c0_44, %c0_45] : memref<1x8x384xf32, #tpu.memory_space<vmem>>, vector<1x8x384xf32>
    %70 = vector.shape_cast %69 : vector<1x8x384xf32> to vector<8x384xf32>
    %71 = vector.shape_cast %68 : vector<8x384xf32> to vector<1x8x384xf32>
    tpu.vector_store %arg4[%c0_43, %c0_44, %c0_45], %71 {strides = array<i32>} : memref<1x8x384xf32, #tpu.memory_space<vmem>>, vector<1x8x384xf32>,
    return
  }
  func.func @transform_0(%arg0: i32) -> (i32, i32, i32) {
    %c0_i32 = arith.constant 0 : i32
    %c0_i32_0 = arith.constant 0 : i32
    %c0_i32_1 = arith.constant 0 : i32
    return %arg0, %c0_i32, %c0_i32_0 : i32, i32, i32
  }
  func.func @transform_1(%arg0: i32) -> (i32, i32, i32) {
    %c0_i32 = arith.constant 0 : i32
    %c0_i32_0 = arith.constant 0 : i32
    %c0_i32_1 = arith.constant 0 : i32
    %c0_i32_2 = arith.constant 0 : i32
    return %c0_i32, %c0_i32_0, %c0_i32_1 : i32, i32, i32
  }
  func.func @transform_2(%arg0: i32) -> (i32, i32) {
    %c0_i32 = arith.constant 0 : i32
    %c0_i32_0 = arith.constant 0 : i32
    %c0_i32_1 = arith.constant 0 : i32
    return %c0_i32, %c0_i32_0 : i32, i32
  }
  func.func @transform_3(%arg0: i32) -> (i32, i32, i32) {
    %c0_i32 = arith.constant 0 : i32
    %c0_i32_0 = arith.constant 0 : i32
    %c0_i32_1 = arith.constant 0 : i32
    return %arg0, %c0_i32, %c0_i32_0 : i32, i32, i32
  }
}

</mosaic_0001>

<bundles_post_ra>
// kernel: inception_block_v2_forward.2
= control target key start
LH: loop header
LB: loop body
LE: loop exit
PB: predicated region body
PF: predicated region fallthrough
CT: control target
= control target key end

     0   :  { %s1492_s17 = smov 0   ;;  %s1697_s0 = inlined_call_operand.vmem [shape: bf16[13,8,4], index: 0, kind: input, shape index: {}]   ;;  %s1698_s1 = inlined_call_operand.vmem [shape: f32[8,1], index: 1, kind: input, shape index: {}]   ;;  %s1699_s2 = inlined_call_operand.vmem [shape: bf16[2,4,484], index: 2, kind: input, shape index: {}]   ;;  %s1700_s3 = inlined_call_operand.<no memory space> [shape: bf16[], index: 3, kind: input, shape index: {}]   ;;  %s1701_s4 = inlined_call_operand.vmem [shape: f32[2,8,384], index: 4, kind: output, shape index: {}]  }
   0x1   :  { %v9_v0 = vstv %s1700_s3 }
   0x2   :  { %v1490_v1 = vunpack.i.l.bf16 %v9_v0 }
   0x3 LB: > { %s1350_s18 = sadd.s32 4294967295, %s1446_s17   ;;  %p1354_p0 = scmp.ge.s32.totalorder %s1446_s17, 1  ;;  %s1446_s17 = sphi %s1492_s17, %s19_s17  }
   0x4   : > { %p143_p1 = scmp.lt.s32.totalorder %s1446_s17, 3 }
   0x6   : > { %p144_p2 = pnand %p1354_p0, %p143_p1 }
   0x8   : > { %147 = sbr.rel (%p144_p2) target bundleno = 456 (0x1c8), region = 32 }
   0xd   : > { %p167_p3 = scmp.lt.s32.totalorder %s1350_s18, 1  ;;  %v186_v2 = vlaneseq  ;;  %s1448_s22 = smov 61   ;;  %vm379_vm2 = vcmask 506880   ;;  %vm313_vm3 = vcmask 1041408   ;;  %vm309_vm4 = vcmask 31744  }
   0xe   : > { %s1449_s23 = smov 62   ;;  %s1450_s24 = smov 60   ;;  %vm305_vm5 = vcmask 498688   ;;  %vm453_vm6 = vcmask 490496   ;;  %vm530_vm7 = vcmask 482304   ;;  %vm607_vm8 = vcmask 474112  }
   0xf   : > { %s1703_s18 = smov (!%p167_p3, %s1350_s18), 1  ;;  %v187_v3 = vshrl.u32 %v186_v2, 7  ;;  %v266_v4 = vand.u32 127, %v186_v2  ;;  %s1451_s25 = smov 59   ;;  %vm761_vm9 = vcmask 457728   ;;  %vm684_vm10 = vcmask 465920  }
  0x10   : > { %s1414_s3 = sshll.u32 %s1703_s18, 3  ;;  %s1452_s26 = smov 58   ;;  %vm838_vm11 = vcmask 1022976   ;;  %vm915_vm12 = vcmask 842752   ;;  %vm992_vm13 = vcmask 662528   ;;  %vm1069_vm14 = vcmask 302080  }
  0x11   : > { %v267_v5 = vadd.s32 384, %v266_v4  ;;  %s171_s21 = scalar_lea.vmem %s1699_s2, %s1414_s3  ;;  %vm189_vm0 = vcmp.lt.s32.totalorder %v187_v3, 4  ;;  %s1453_s27 = smov 57   ;;  %vm1146_vm15 = vcmask 121856  }
  0x12   : > { %v183_v6 = vld [vmem:[%s171_s21] sm:$0x3]  ;;  %v1358_v7 = vld [vmem:[%s171_s21 + $0x2] sm:$0x3]  ;;  %v1359_v8 = vld [vmem:[%s171_s21 + $0x4] sm:$0x3] }
  0x13   : > { %v184_v9 = vunpack.c.l.bf16 %v183_v6  ;;  %v208_v10 = vunpack.c.l.bf16 %v1358_v7  ;;  %v233_v11 = vunpack.c.l.bf16 %v1359_v8  ;;  %v1360_v12 = vld [vmem:[%s171_s21 + $0x6] sm:$0x3]  ;;  %vm268_vm1 = vcmp.lt.s32.totalorder %v267_v5, 484  ;;  %s1454_s28 = smov 56   ;;  %s1455_s29 = smov 125  }
  0x14   : > { %v258_v13 = vunpack.c.l.bf16 %v1360_v12  ;;  %s1456_s30 = smov 103   ;;  %s1457_s5 = smov 81  }
  0x15   : > { %v190_v14 = vsel %vm189_vm0, %v184_v9, %v1490_v1  ;;  %v214_v15 = vsel %vm189_vm0, %v208_v10, %v1490_v1  ;;  %v239_v16 = vsel %vm189_vm0, %v233_v11, %v1490_v1  ;;  %v276_v10 = vpack.c.bf16 0.0, %v1490_v1  ;;  %s1458_s6 = smov 37   ;;  %s1459_s9 = smov 15  }
  0x16   : > { %v196_v17 = vpack.c.bf16 0.0, %v190_v14  ;;  %v221_v18 = vpack.c.bf16 0.0, %v214_v15  ;;  %v246_v19 = vpack.c.bf16 0.0, %v239_v16  ;;  %v264_v20 = vsel %vm189_vm0, %v258_v13, %v1490_v1  ;;  %v1536_v14 = vld [vmem:[%s1697_s0] sm:$0xf]  ;;  %s1460_s12 = smov 121  }
  0x17   : > { %v269_v21 = vsel %vm268_vm1, %v264_v20, %v1490_v1  ;;  %279 = vst [vmem:[#allocation7 + $0x8] sm:$0x3] %v276_v10  ;;  %vm1226_vm0 = vcmask 990208  }
  0x18   : > { %199 = vst [vmem:[#allocation7] sm:$0x3] %v196_v17  ;;  %v271_v22 = vpack.c.bf16 0.0, %v269_v21 }
  0x19   : > { %224 = vst [vmem:[#allocation7 + $0x2] sm:$0x3] %v221_v18 }
  0x1a   : > { %249 = vst [vmem:[#allocation7 + $0x4] sm:$0x3] %v246_v19 }
  0x1b   : > { %274 = vst [vmem:[#allocation7 + $0x6] sm:$0x3] %v271_v22 }
  0x1e   : > { %v283_v15 = vld [vmem:[#allocation7 + $0x8] sm:$0x3] }
  0x1f   : > { %1209 = vst [vmem:[#allocation1 + $0x20] ss:$4 sm:$0xff] %v283_v15  ;;  %v1376_v15 = vld [vmem:[%s1697_s0 + $0x10] sm:$0xf] }
  0x22   : > { %v1515_v23 = vld [vmem:[#allocation7] sm:$0xff] }
  0x23   : > { %288 = vst [vmem:[#allocation1] ss:$4 sm:$0xff] %v1515_v23 }
  0x2a   : > { %v293_v24 = vld.sshfl [vmem:[#allocation1 + $0x10] sm:$0xff pattern:$0x73625140]  ;;  %v289_v25 = vld.sshfl [vmem:[#allocation1] sm:$0xff pattern:$0x73625140] }
  0x2b   : > { %301 = vrot.lane.b32.xlu0 %v293_v24, %s1448_s22  ;;  %297 = vrot.lane.b32.xlu1 %v289_v25, %s1448_s22  ;;  %v295_v26 = vld.sshfl [vmem:[#allocation1 + $0x18] sm:$0xff pattern:$0x73625140]  ;;  %v291_v27 = vld.sshfl [vmem:[#allocation1 + $0x8] sm:$0xff pattern:$0x73625140] }
  0x2c   : > { %362 = vst [vmem:[#allocation1] ss:$4 sm:$0xff] %v1515_v23 }
  0x33   : > { %303 = vrot.lane.b32.xlu0 %v295_v26, %s1448_s22  ;;  %299 = vrot.lane.b32.xlu1 %v291_v27, %s1448_s22  ;;  %v363_v28 = vld.sshfl [vmem:[#allocation1] sm:$0xff pattern:$0x73625140]  ;;  %v365_v29 = vld.sshfl [vmem:[#allocation1 + $0x8] sm:$0xff pattern:$0x73625140] }
  0x34   : > { %v367_v30 = vld.sshfl [vmem:[#allocation1 + $0x10] sm:$0xff pattern:$0x73625140]  ;;  %v369_v31 = vld.sshfl [vmem:[#allocation1 + $0x18] sm:$0xff pattern:$0x73625140]  ;;  %371 = vrot.lane.b32.xlu2 %v363_v28, %s1449_s23 }
  0x35   : > { %436 = vst [vmem:[#allocation1] ss:$4 sm:$0xff] %v1515_v23 }
  0x3c   : > { %v439_v32 = vld.sshfl [vmem:[#allocation1 + $0x8] sm:$0xff pattern:$0x73625140]  ;;  %v437_v33 = vld.sshfl [vmem:[#allocation1] sm:$0xff pattern:$0x73625140]  ;;  %373 = vrot.lane.b32.xlu2 %v365_v29, %s1449_s23 }
  0x3d   : > { %447 = vrot.lane.b32.xlu1 %v439_v32, %s1450_s24  ;;  %445 = vrot.lane.b32.xlu0 %v437_v33, %s1450_s24  ;;  %v441_v34 = vld.sshfl [vmem:[#allocation1 + $0x10] sm:$0xff pattern:$0x73625140]  ;;  %v443_v35 = vld.sshfl [vmem:[#allocation1 + $0x18] sm:$0xff pattern:$0x73625140] }
  0x3e   : > { %513 = vst [vmem:[#allocation1] ss:$4 sm:$0xff] %v1515_v23  ;;  %v1216_v32 = vld.sshfl [vmem:[#allocation1 + $0x20] sm:$0xff pattern:$0x73625140] }
  0x44   : > { %375 = vrot.lane.b32.xlu2 %v367_v30, %s1449_s23  ;;  %v1361_v30 = vld [vmem:[%s1697_s0 + $0x4] sm:$0xf] }
  0x45   : > { %449 = vrot.lane.b32.xlu1 %v441_v34, %s1450_s24  ;;  %377 = vrot.lane.b32.xlu0 %v369_v31, %s1449_s23  ;;  %v518_v36 = vld.sshfl [vmem:[#allocation1 + $0x10] sm:$0xff pattern:$0x73625140]  ;;  %v514_v37 = vld.sshfl [vmem:[#allocation1] sm:$0xff pattern:$0x73625140] }
  0x46   : > { %v516_v38 = vld.sshfl [vmem:[#allocation1 + $0x8] sm:$0xff pattern:$0x73625140]  ;;  %v520_v39 = vld.sshfl [vmem:[#allocation1 + $0x18] sm:$0xff pattern:$0x73625140] }
  0x47   : > { %590 = vst [vmem:[#allocation1] ss:$4 sm:$0xff] %v1515_v23 }
  0x4c   : > { %524 = vrot.lane.b32.xlu2 %v516_v38, %s1451_s25 }
  0x4d   : > { %451 = vrot.lane.b32.xlu1 %v443_v35, %s1450_s24  ;;  %526 = vrot.lane.b32.xlu0 %v518_v36, %s1451_s25 }
  0x4e   : > { %v595_v40 = vld.sshfl [vmem:[#allocation1 + $0x10] sm:$0xff pattern:$0x73625140]  ;;  %v597_v41 = vld.sshfl [vmem:[#allocation1 + $0x18] sm:$0xff pattern:$0x73625140] }
  0x4f   : > { %v593_v42 = vld.sshfl [vmem:[#allocation1 + $0x8] sm:$0xff pattern:$0x73625140]  ;;  %v591_v43 = vld.sshfl [vmem:[#allocation1] sm:$0xff pattern:$0x73625140] }
  0x50   : > { %667 = vst [vmem:[#allocation1] ss:$4 sm:$0xff] %v1515_v23 }
  0x54   : > { %522 = vrot.lane.b32.xlu2 %v514_v37, %s1451_s25 }
  0x55   : > { %528 = vrot.lane.b32.xlu0 %v520_v39, %s1451_s25  ;;  %603 = vrot.lane.b32.xlu1 %v595_v40, %s1452_s26 }
  0x57   : > { %v670_v44 = vld.sshfl [vmem:[#allocation1 + $0x8] sm:$0xff pattern:$0x73625140]  ;;  %v672_v45 = vld.sshfl [vmem:[#allocation1 + $0x10] sm:$0xff pattern:$0x73625140] }
  0x58   : > { %v674_v46 = vld.sshfl [vmem:[#allocation1 + $0x18] sm:$0xff pattern:$0x73625140]  ;;  %v668_v47 = vld.sshfl [vmem:[#allocation1] sm:$0xff pattern:$0x73625140] }
  0x59   : > { %744 = vst [vmem:[#allocation1] ss:$4 sm:$0xff] %v1515_v23 }
  0x5c   : > { %605 = vrot.lane.b32.xlu2 %v597_v41, %s1452_s26 }
  0x5d   : > { %601 = vrot.lane.b32.xlu1 %v593_v42, %s1452_s26  ;;  %599 = vrot.lane.b32.xlu0 %v591_v43, %s1452_s26 }
  0x60   : > { %v747_v48 = vld.sshfl [vmem:[#allocation1 + $0x8] sm:$0xff pattern:$0x73625140]  ;;  %v749_v49 = vld.sshfl [vmem:[#allocation1 + $0x10] sm:$0xff pattern:$0x73625140] }
  0x61   : > { %v751_v50 = vld.sshfl [vmem:[#allocation1 + $0x18] sm:$0xff pattern:$0x73625140]  ;;  %v745_v51 = vld.sshfl [vmem:[#allocation1] sm:$0xff pattern:$0x73625140] }
  0x62   : > { %821 = vst [vmem:[#allocation1] ss:$4 sm:$0xff] %v1515_v23 }
  0x64   : > { %676 = vrot.lane.b32.xlu2 %v668_v47, %s1453_s27 }
  0x65   : > { %678 = vrot.lane.b32.xlu0 %v670_v44, %s1453_s27  ;;  %753 = vrot.lane.b32.xlu1 %v745_v51, %s1454_s28 }
  0x69   : > { %v824_v52 = vld.sshfl [vmem:[#allocation1 + $0x8] sm:$0xff pattern:$0x73625140]  ;;  %v826_v53 = vld.sshfl [vmem:[#allocation1 + $0x10] sm:$0xff pattern:$0x73625140] }
  0x6a   : > { %v822_v54 = vld.sshfl [vmem:[#allocation1] sm:$0xff pattern:$0x73625140]  ;;  %v828_v55 = vld.sshfl [vmem:[#allocation1 + $0x18] sm:$0xff pattern:$0x73625140] }
  0x6b   : > { %898 = vst [vmem:[#allocation1] ss:$4 sm:$0xff] %v1515_v23 }
  0x6c   : > { %755 = vrot.lane.b32.xlu2 %v747_v48, %s1454_s28  ;;  %v1368_v48 = vld [vmem:[%s1697_s0 + $0x8] sm:$0xf] }
  0x6d   : > { %680 = vrot.lane.b32.xlu0 %v672_v45, %s1453_s27  ;;  %682 = vrot.lane.b32.xlu1 %v674_v46, %s1453_s27 }
  0x72   : > { %v901_v56 = vld.sshfl [vmem:[#allocation1 + $0x8] sm:$0xff pattern:$0x73625140]  ;;  %v903_v57 = vld.sshfl [vmem:[#allocation1 + $0x10] sm:$0xff pattern:$0x73625140] }
  0x73   : > { %v905_v58 = vld.sshfl [vmem:[#allocation1 + $0x18] sm:$0xff pattern:$0x73625140]  ;;  %v899_v59 = vld.sshfl [vmem:[#allocation1] sm:$0xff pattern:$0x73625140] }
  0x74   : > { %757 = vrot.lane.b32.xlu2 %v749_v49, %s1454_s28  ;;  %975 = vst [vmem:[#allocation1] ss:$4 sm:$0xff] %v1515_v23 }
  0x75   : > { %832 = vrot.lane.b32.xlu0 %v824_v52, %s1455_s29  ;;  %834 = vrot.lane.b32.xlu1 %v826_v53, %s1455_s29 }
  0x7b   : > { %v980_v60 = vld.sshfl [vmem:[#allocation1 + $0x10] sm:$0xff pattern:$0x73625140]  ;;  %v982_v61 = vld.sshfl [vmem:[#allocation1 + $0x18] sm:$0xff pattern:$0x73625140] }
  0x7c   : > { %v976_v62 = vld.sshfl [vmem:[#allocation1] sm:$0xff pattern:$0x73625140]  ;;  %759 = vrot.lane.b32.xlu2 %v751_v50, %s1454_s28  ;;  %v978_v63 = vld.sshfl [vmem:[#allocation1 + $0x8] sm:$0xff pattern:$0x73625140] }
  0x7d   : > { %830 = vrot.lane.b32.xlu0 %v822_v54, %s1455_s29  ;;  %836 = vrot.lane.b32.xlu1 %v828_v55, %s1455_s29  ;;  %1052 = vst [vmem:[#allocation1] ss:$4 sm:$0xff] %v1515_v23 }
  0x84   : > { %v1053_v0 = vld.sshfl [vmem:[#allocation1] sm:$0xff pattern:$0x73625140]  ;;  %v1059_v2 = vld.sshfl [vmem:[#allocation1 + $0x18] sm:$0xff pattern:$0x73625140]  ;;  %911 = vrot.lane.b32.xlu2 %v903_v57, %s1456_s30 }
  0x85   : > { %913 = vrot.lane.b32.xlu0 %v905_v58, %s1456_s30  ;;  %907 = vrot.lane.b32.xlu1 %v899_v59, %s1456_s30  ;;  %v1055_v3 = vld.sshfl [vmem:[#allocation1 + $0x8] sm:$0xff pattern:$0x73625140]  ;;  %v1057_v4 = vld.sshfl [vmem:[#allocation1 + $0x10] sm:$0xff pattern:$0x73625140] }
  0x86   : > { %1129 = vst [vmem:[#allocation1] ss:$4 sm:$0xff] %v1515_v23 }
  0x8c   : > { %909 = vrot.lane.b32.xlu2 %v901_v56, %s1456_s30 }
  0x8d   : > { %984 = vrot.lane.b32.xlu0 %v976_v62, %s1457_s5  ;;  %986 = vrot.lane.b32.xlu1 %v978_v63, %s1457_s5  ;;  %v1134_v5 = vld.sshfl [vmem:[#allocation1 + $0x10] sm:$0xff pattern:$0x73625140]  ;;  %v1136_v6 = vld.sshfl [vmem:[#allocation1 + $0x18] sm:$0xff pattern:$0x73625140] }
  0x8e   : > { %v372_v7 = vpop.permute.xlu2 %371  ;;  %v1132_v8 = vld.sshfl [vmem:[#allocation1 + $0x8] sm:$0xff pattern:$0x73625140]  ;;  %v1130_v9 = vld.sshfl [vmem:[#allocation1] sm:$0xff pattern:$0x73625140] }
  0x8f   : > { %1206 = vst [vmem:[#allocation1] ss:$4 sm:$0xff] %v1515_v23 }
  0x94   : > { %1061 = vrot.lane.b32.xlu2 %v1053_v0, %s1458_s6  ;;  %v1372_v0 = vld [vmem:[%s1697_s0 + $0xc] sm:$0xf] }
  0x95   : > { %1063 = vrot.lane.b32.xlu0 %v1055_v3, %s1458_s6  ;;  %988 = vrot.lane.b32.xlu1 %v980_v60, %s1457_s5 }
  0x96   : > { %v374_v11 = vpop.permute.xlu2 %373  ;;  %v1214_v31 = vld.sshfl [vmem:[#allocation1 + $0x18] sm:$0xff pattern:$0x73625140]  ;;  %v1212_v38 = vld.sshfl [vmem:[#allocation1 + $0x10] sm:$0xff pattern:$0x73625140] }
  0x97   : > { %v380_v12 = vsel %vm379_vm2, %v372_v7, %v374_v11  ;;  %v1210_v49 = vld.sshfl [vmem:[#allocation1 + $0x8] sm:$0xff pattern:$0x73625140] }
  0x98   : > { %v387_v13 = vsel %vm313_vm3, %v380_v12, 0 }
  0x99   : > { %402 = vmatpush.bf16.msra.mxu3 %v387_v13 }
  0x9c   : > { %1365 = vmatmul.msk.bf16.vlgmr.msra.gmra.mxu3 %vm309_vm4, %v1536_v14  ;;  %990 = vrot.lane.b32.xlu2 %v982_v61, %s1457_s5 }
  0x9d   : > { %v302_v16 = vpop.permute.xlu0 %301  ;;  %v298_v17 = vpop.permute.xlu1 %297  ;;  %1065 = vrot.lane.b32.xlu0 %v1057_v4, %s1458_s6  ;;  %1140 = vrot.lane.b32.xlu1 %v1132_v8, %s1459_s9 }
  0x9e   : > { %v376_v18 = vpop.permute.xlu2 %375 }
  0x9f   : > { %v381_v19 = vsel %vm379_vm2, %v374_v11, %v376_v18 }
  0xa0   : > { %v390_v25 = vsel %vm313_vm3, %v381_v19, 0  ;;  %v1380_v19 = vld [vmem:[%s1697_s0 + $0x14] sm:$0xf] }
  0xa4   : > { %1142 = vrot.lane.b32.xlu2 %v1134_v5, %s1459_s9 }
  0xa5   : > { %v304_v20 = vpop.permute.xlu0 %303  ;;  %v300_v21 = vpop.permute.xlu1 %299  ;;  %1067 = vrot.lane.b32.xlu0 %v1059_v2, %s1458_s6  ;;  %1138 = vrot.lane.b32.xlu1 %v1130_v9, %s1459_s9 }
  0xa6   : > { %v306_v22 = vsel %vm305_vm5, %v298_v17, %v300_v21  ;;  %v307_v23 = vsel %vm305_vm5, %v300_v21, %v302_v16  ;;  %v308_v24 = vsel %vm305_vm5, %v302_v16, %v304_v20  ;;  %v525_v26 = vpop.permute.xlu2 %524 }
  0xa7   : > { %v315_v27 = vsel %vm313_vm3, %v306_v22, 0  ;;  %v318_v28 = vsel %vm313_vm3, %v307_v23, 0  ;;  %v321_v29 = vsel %vm313_vm3, %v308_v24, 0 }
  0xa8   : > { %330 = vmatpush.bf16.msra.mxu0 %v315_v27  ;;  %343 = vmatpush.bf16.msra.mxu1 %v318_v28 }
  0xa9   : > { %356 = vmatpush.bf16.msra.mxu2 %v321_v29 }
  0xab   : > { %1362 = vmatmul.msk.bf16.vlgmr.msra.gmra.mxu0 %vm309_vm4, %v1361_v30  ;;  %1363 = vmatmul.msk.bf16.vlgmr.msra.gmra.mxu1 %vm309_vm4, %v1361_v30 }
  0xac   : > { %415 = vmatpush.bf16.msrb.mxu0 %v390_v25  ;;  %1364 = vmatmul.msk.bf16.vlgmr.msra.gmra.mxu2 %vm309_vm4, %v1361_v30 }
  0xad   : > { %1144 = vrot.lane.b32.xlu2 %v1136_v6, %s1459_s9  ;;  %1222 = vrot.lane.b32.xlu0 %v1214_v31, %s1460_s12 }
  0xae   : > { %1224 = vrot.lane.b32.xlu1 %v1216_v32, %s1460_s12  ;;  %v523_v33 = vpop.permute.xlu2 %522 }
  0xaf   : > { %v448_v34 = vpop.permute.xlu1 %447  ;;  %v446_v35 = vpop.permute.xlu0 %445  ;;  %v531_v39 = vsel %vm530_vm7, %v523_v33, %v525_v26 }
  0xb0   : > { %v454_v36 = vsel %vm453_vm6, %v446_v35, %v448_v34  ;;  %v538_v45 = vsel %vm313_vm3, %v531_v39, 0 }
  0xb1   : > { %v461_v37 = vsel %vm313_vm3, %v454_v36, 0 }
  0xb2   : > { %476 = vmatpush.bf16.msrb.mxu2 %v461_v37 }
  0xb5   : > { %1220 = vrot.lane.b32.xlu0 %v1212_v38, %s1460_s12  ;;  %1218 = vrot.lane.b32.xlu2 %v1210_v49, %s1460_s12  ;;  %s1415_s12 = smul.u32 24, %s1703_s18 }
  0xb6   : > { %v606_v40 = vpop.permute.xlu2 %605 }
  0xb7   : > { %v450_v41 = vpop.permute.xlu1 %449  ;;  %v378_v42 = vpop.permute.xlu0 %377  ;;  %s176_s15 = scalar_lea.vmem %s1701_s4, %s1415_s12 }
  0xb8   : > { %v382_v43 = vsel %vm379_vm2, %v376_v18, %v378_v42  ;;  %v455_v44 = vsel %vm453_vm6, %v448_v34, %v450_v41  ;;  %v1384_v34 = vld [vmem:[%s1697_s0 + $0x18] sm:$0xf] }
  0xb9   : > { %v393_v46 = vsel %vm313_vm3, %v382_v43, 0  ;;  %v464_v47 = vsel %vm313_vm3, %v455_v44, 0 }
  0xba   : > { %428 = vmatpush.bf16.msrb.mxu1 %v393_v46  ;;  %489 = vmatpush.bf16.msrb.mxu3 %v464_v47 }
  0xbb   : > { %1366 = vmatmul.msk.bf16.vlgmr.msrb.gmra.mxu0 %vm309_vm4, %v1536_v14 }
  0xbc   : > { %1369 = vmatmul.msk.bf16.vlgmr.msrb.gmra.mxu2 %vm309_vm4, %v1368_v48 }
  0xbd   : > { %1367 = vmatmul.msk.bf16.vlgmr.msrb.gmra.mxu1 %vm309_vm4, %v1536_v14  ;;  %1370 = vmatmul.msk.bf16.vlgmr.msrb.gmra.mxu3 %vm309_vm4, %v1368_v48 }
  0xbe   : > { %553 = vmatpush.bf16.msra.mxu1 %v538_v45  ;;  %v677_v50 = vpop.permute.xlu2 %676 }
  0xbf   : > { %v452_v51 = vpop.permute.xlu1 %451  ;;  %v527_v52 = vpop.permute.xlu0 %526 }
  0xc0   : > { %v456_v53 = vsel %vm453_vm6, %v450_v41, %v452_v51  ;;  %v532_v54 = vsel %vm530_vm7, %v525_v26, %v527_v52 }
  0xc1   : > { %v467_v55 = vsel %vm313_vm3, %v456_v53, 0  ;;  %v541_v56 = vsel %vm313_vm3, %v532_v54, 0 }
  0xc2   : > { %502 = vmatpush.bf16.msra.mxu0 %v467_v55  ;;  %566 = vmatpush.bf16.msra.mxu2 %v541_v56 }
  0xc6   : > { %v756_v57 = vpop.permute.xlu2 %755 }
  0xc7   : > { %v529_v58 = vpop.permute.xlu0 %528  ;;  %v604_v59 = vpop.permute.xlu1 %603 }
  0xc8   : > { %v533_v60 = vsel %vm530_vm7, %v527_v52, %v529_v58  ;;  %v610_v61 = vsel %vm607_vm8, %v604_v59, %v606_v40 }
  0xc9   : > { %v544_v62 = vsel %vm313_vm3, %v533_v60, 0  ;;  %v621_v63 = vsel %vm313_vm3, %v610_v61, 0  ;;  %v1392_v60 = vld [vmem:[%s1697_s0 + $0x20] sm:$0xf] }
  0xca   : > { %579 = vmatpush.bf16.msra.mxu3 %v544_v62  ;;  %656 = vmatpush.bf16.msrb.mxu2 %v621_v63 }
  0xcb   : > { %1371 = vmatmul.msk.bf16.vlgmr.msra.gmra.mxu0 %vm309_vm4, %v1368_v48 }
  0xcc   : > { %1374 = vmatmul.msk.bf16.vlgmr.msra.gmra.mxu2 %vm309_vm4, %v1372_v0 }
  0xcd   : > { %1373 = vmatmul.msk.bf16.vlgmr.msra.gmra.mxu1 %vm309_vm4, %v1372_v0  ;;  %1375 = vmatmul.msk.bf16.vlgmr.msra.gmra.mxu3 %vm309_vm4, %v1372_v0 }
  0xce   : > { %v758_v2 = vpop.permute.xlu2 %757 }
  0xcf   : > { %v602_v3 = vpop.permute.xlu1 %601  ;;  %v600_v4 = vpop.permute.xlu0 %599  ;;  %v763_v9 = vsel %vm761_vm9, %v756_v57, %v758_v2 }
  0xd0   : > { %v609_v5 = vsel %vm607_vm8, %v602_v3, %v604_v59  ;;  %v608_v6 = vsel %vm607_vm8, %v600_v4, %v602_v3  ;;  %v772_v16 = vsel %vm313_vm3, %v763_v9, 0  ;;  %v1396_v3 = vld [vmem:[%s1697_s0 + $0x24] sm:$0xf] }
  0xd1   : > { %v618_v7 = vsel %vm313_vm3, %v609_v5, 0  ;;  %v615_v8 = vsel %vm313_vm3, %v608_v6, 0 }
  0xd2   : > { %643 = vmatpush.bf16.msrb.mxu1 %v618_v7  ;;  %630 = vmatpush.bf16.msrb.mxu0 %v615_v8 }
  0xd6   : > { %v760_v10 = vpop.permute.xlu2 %759 }
  0xd7   : > { %v679_v11 = vpop.permute.xlu0 %678  ;;  %v754_v12 = vpop.permute.xlu1 %753  ;;  %v764_v20 = vsel %vm761_vm9, %v758_v2, %v760_v10 }
  0xd8   : > { %v685_v13 = vsel %vm684_vm10, %v677_v50, %v679_v11  ;;  %v762_v14 = vsel %vm761_vm9, %v754_v12, %v756_v57  ;;  %v775_v26 = vsel %vm313_vm3, %v764_v20, 0  ;;  %v1388_v50 = vld [vmem:[%s1697_s0 + $0x1c] sm:$0xf] }
  0xd9   : > { %v692_v17 = vsel %vm313_vm3, %v685_v13, 0  ;;  %v769_v18 = vsel %vm313_vm3, %v762_v14, 0 }
  0xda   : > { %707 = vmatpush.bf16.msrb.mxu3 %v692_v17  ;;  %784 = vmatpush.bf16.msra.mxu2 %v769_v18  ;;  %v1400_v17 = vld [vmem:[%s1697_s0 + $0x28] sm:$0xf] }
  0xdb   : > { %1377 = vmatmul.msk.bf16.vlgmr.msrb.gmra.mxu0 %vm309_vm4, %v1376_v15 }
  0xdc   : > { %1379 = vmatmul.msk.bf16.vlgmr.msrb.gmra.mxu2 %vm309_vm4, %v1376_v15 }
  0xdd   : > { %1378 = vmatmul.msk.bf16.vlgmr.msrb.gmra.mxu1 %vm309_vm4, %v1376_v15  ;;  %1381 = vmatmul.msk.bf16.vlgmr.msrb.gmra.mxu3 %vm309_vm4, %v1380_v19 }
  0xde   : > { %797 = vmatpush.bf16.msra.mxu3 %v772_v16  ;;  %v912_v21 = vpop.permute.xlu2 %911 }
  0xdf   : > { %v681_v22 = vpop.permute.xlu0 %680  ;;  %v683_v23 = vpop.permute.xlu1 %682 }
  0xe0   : > { %v686_v24 = vsel %vm684_vm10, %v679_v11, %v681_v22  ;;  %v687_v25 = vsel %vm684_vm10, %v681_v22, %v683_v23 }
  0xe1   : > { %v695_v27 = vsel %vm313_vm3, %v686_v24, 0  ;;  %v698_v28 = vsel %vm313_vm3, %v687_v25, 0 }
  0xe2   : > { %720 = vmatpush.bf16.msra.mxu0 %v695_v27  ;;  %733 = vmatpush.bf16.msra.mxu1 %v698_v28 }
  0xe6   : > { %810 = vmatpush.bf16.msrb.mxu0 %v775_v26  ;;  %v910_v29 = vpop.permute.xlu2 %909 }
  0xe7   : > { %v833_v30 = vpop.permute.xlu0 %832  ;;  %v835_v31 = vpop.permute.xlu1 %834  ;;  %v917_v35 = vsel %vm915_vm12, %v910_v29, %v912_v21 }
  0xe8   : > { %v840_v32 = vsel %vm838_vm11, %v833_v30, %v835_v31  ;;  %v926_v41 = vsel %vm313_vm3, %v917_v35, 0 }
  0xe9   : > { %v849_v33 = vsel %vm313_vm3, %v840_v32, 0 }
  0xea   : > { %874 = vmatpush.bf16.msrb.mxu2 %v849_v33 }
  0xeb   : > { %1382 = vmatmul.msk.bf16.vlgmr.msra.gmra.mxu0 %vm309_vm4, %v1380_v19 }
  0xec   : > { %1385 = vmatmul.msk.bf16.vlgmr.msra.gmra.mxu2 %vm309_vm4, %v1384_v34 }
  0xed   : > { %1383 = vmatmul.msk.bf16.vlgmr.msra.gmra.mxu1 %vm309_vm4, %v1380_v19  ;;  %1386 = vmatmul.msk.bf16.vlgmr.msra.gmra.mxu3 %vm309_vm4, %v1384_v34 }
  0xee   : > { %v1062_v36 = vpop.permute.xlu2 %1061 }
  0xef   : > { %v831_v37 = vpop.permute.xlu0 %830  ;;  %v837_v38 = vpop.permute.xlu1 %836 }
  0xf0   : > { %v839_v39 = vsel %vm838_vm11, %v831_v37, %v833_v30  ;;  %v841_v40 = vsel %vm838_vm11, %v835_v31, %v837_v38  ;;  %v1404_v31 = vld [vmem:[%s1697_s0 + $0x2c] sm:$0xf]  ;;  %v281_v37 = vld [vmem:[%s1698_s1] sm:$0xff] }
  0xf1   : > { %v846_v42 = vsel %vm313_vm3, %v839_v39, 0  ;;  %v852_v43 = vsel %vm313_vm3, %v841_v40, 0 }
  0xf2   : > { %861 = vmatpush.bf16.msrb.mxu1 %v846_v42  ;;  %887 = vmatpush.bf16.msrb.mxu3 %v852_v43  ;;  %v1408_v43 = vld [vmem:[%s1697_s0 + $0x30] sm:$0xf] }
  0xf6   : > { %951 = vmatpush.bf16.msra.mxu1 %v926_v41  ;;  %v991_v44 = vpop.permute.xlu2 %990 }
  0xf7   : > { %v914_v45 = vpop.permute.xlu0 %913  ;;  %v908_v46 = vpop.permute.xlu1 %907 }
  0xf8   : > { %v918_v47 = vsel %vm915_vm12, %v912_v21, %v914_v45  ;;  %v916_v48 = vsel %vm915_vm12, %v908_v46, %v910_v29 }
  0xf9   : > { %v929_v49 = vsel %vm313_vm3, %v918_v47, 0  ;;  %v923_v51 = vsel %vm313_vm3, %v916_v48, 0 }
  0xfa   : > { %964 = vmatpush.bf16.msra.mxu2 %v929_v49  ;;  %938 = vmatpush.bf16.msra.mxu0 %v923_v51 }
  0xfb   : > { %1387 = vmatmul.msk.bf16.vlgmr.msrb.gmra.mxu0 %vm309_vm4, %v1384_v34 }
  0xfc   : > { %1390 = vmatmul.msk.bf16.vlgmr.msrb.gmra.mxu2 %vm309_vm4, %v1388_v50 }
  0xfd   : > { %1389 = vmatmul.msk.bf16.vlgmr.msrb.gmra.mxu1 %vm309_vm4, %v1388_v50  ;;  %1391 = vmatmul.msk.bf16.vlgmr.msrb.gmra.mxu3 %vm309_vm4, %v1388_v50 }
  0xfe   : > { %v1143_v55 = vpop.permute.xlu2 %1142 }
  0xff   : > { %v985_v52 = vpop.permute.xlu0 %984  ;;  %v987_v53 = vpop.permute.xlu1 %986 }
 0x100   : > { %v993_v54 = vsel %vm992_vm13, %v985_v52, %v987_v53 }
 0x101   : > { %v1000_v56 = vsel %vm313_vm3, %v993_v54, 0 }
 0x102   : > { %1015 = vmatpush.bf16.msra.mxu3 %v1000_v56 }
 0x107   : > { %v1064_v57 = vpop.permute.xlu0 %1063  ;;  %v989_v58 = vpop.permute.xlu1 %988 }
 0x108   : > { %v1070_v59 = vsel %vm1069_vm14, %v1062_v36, %v1064_v57  ;;  %v994_v61 = vsel %vm992_vm13, %v987_v53, %v989_v58  ;;  %v995_v62 = vsel %vm992_vm13, %v989_v58, %v991_v44  ;;  %v1145_v4 = vpop.permute.xlu2 %1144  ;;  %v1461_v36 = vmov 0  }
 0x109   : > { %v1077_v63 = vsel %vm313_vm3, %v1070_v59, 0  ;;  %v1003_v0 = vsel %vm313_vm3, %v994_v61, 0  ;;  %v1006_v2 = vsel %vm313_vm3, %v995_v62, 0  ;;  %v1149_v5 = vsel %vm1146_vm15, %v1143_v55, %v1145_v4  ;;  %1438 = vset.pattern.permute.xlu1 %v1461_v36  ;;  %1439 = vset.pattern.permute.xlu0 %v1461_v36 }
 0x10a   : > { %1028 = vmatpush.bf16.msrb.mxu0 %v1003_v0  ;;  %1092 = vmatpush.bf16.msrb.mxu2 %v1077_v63  ;;  %v1160_v10 = vsel %vm313_vm3, %v1149_v5, 0 }
 0x10b   : > { %1393 = vmatmul.msk.bf16.vlgmr.msra.gmra.mxu0 %vm309_vm4, %v1392_v60  ;;  %1041 = vmatpush.bf16.msrb.mxu1 %v1006_v2 }
 0x10c   : > { %1395 = vmatmul.msk.bf16.vlgmr.msra.gmra.mxu2 %vm309_vm4, %v1392_v60  ;;  %1286 = vperm.xlu1 %1438, %v281_v37  }
 0x10d   : > { %1394 = vmatmul.msk.bf16.vlgmr.msra.gmra.mxu1 %vm309_vm4, %v1392_v60  ;;  %1397 = vmatmul.msk.bf16.vlgmr.msra.gmra.mxu3 %vm309_vm4, %v1396_v3 }
 0x10f   : > { %v1066_v6 = vpop.permute.xlu0 %1065  ;;  %v1141_v7 = vpop.permute.xlu1 %1140 }
 0x110   : > { %v1071_v8 = vsel %vm1069_vm14, %v1064_v57, %v1066_v6  ;;  %v1148_v9 = vsel %vm1146_vm15, %v1141_v7, %v1143_v55  ;;  %v1219_v25 = vpop.permute.xlu2 %1218 }
 0x111   : > { %v1080_v11 = vsel %vm313_vm3, %v1071_v8, 0  ;;  %v1157_v12 = vsel %vm313_vm3, %v1148_v9, 0 }
 0x112   : > { %1105 = vmatpush.bf16.msrb.mxu3 %v1080_v11  ;;  %1182 = vmatpush.bf16.msra.mxu2 %v1157_v12 }
 0x116   : > { %1195 = vmatpush.bf16.msra.mxu3 %v1160_v10 }
 0x117   : > { %v1068_v13 = vpop.permute.xlu0 %1067  ;;  %v1139_v14 = vpop.permute.xlu1 %1138 }
 0x118   : > { %v1072_v15 = vsel %vm1069_vm14, %v1066_v6, %v1068_v13  ;;  %v1147_v16 = vsel %vm1146_vm15, %v1139_v14, %v1141_v7 }
 0x119   : > { %v1083_v18 = vsel %vm313_vm3, %v1072_v15, 0  ;;  %v1154_v19 = vsel %vm313_vm3, %v1147_v16, 0 }
 0x11a   : > { %1118 = vmatpush.bf16.msra.mxu0 %v1083_v18  ;;  %1169 = vmatpush.bf16.msra.mxu1 %v1154_v19 }
 0x11b   : > { %1398 = vmatmul.msk.bf16.vlgmr.msrb.gmra.mxu0 %vm309_vm4, %v1396_v3 }
 0x11c   : > { %1401 = vmatmul.msk.bf16.vlgmr.msrb.gmra.mxu2 %vm309_vm4, %v1400_v17 }
 0x11d   : > { %1399 = vmatmul.msk.bf16.vlgmr.msrb.gmra.mxu1 %vm309_vm4, %v1396_v3  ;;  %1402 = vmatmul.msk.bf16.vlgmr.msrb.gmra.mxu3 %vm309_vm4, %v1400_v17 }
 0x11f   : > { %v1223_v20 = vpop.permute.xlu0 %1222  ;;  %v404_v23 = vpop.f32.mrf.mxu3 }
 0x120   : > { %v1225_v21 = vpop.permute.xlu1 %1224 }
 0x121   : > { %v1229_v22 = vsel %vm1226_vm0, %v1223_v20, %v1225_v21 }
 0x122   : > { %v1240_v24 = vsel %vm313_vm3, %v1229_v22, 0 }
 0x123   : > { %1275 = vmatpush.bf16.msrb.mxu2 %v1240_v24 }
 0x127   : > { %v1221_v26 = vpop.permute.xlu0 %1220  ;;  %v406_v35 = vpop.f32.mrf.mxu3 }
 0x128   : > { %v332_v27 = vpop.f32.mrf.mxu0  ;;  %v345_v28 = vpop.f32.mrf.mxu1  ;;  %v1228_v29 = vsel %vm1226_vm0, %v1221_v26, %v1223_v20  ;;  %v1227_v30 = vsel %vm1226_vm0, %v1219_v25, %v1221_v26 }
 0x129   : > { %v1237_v32 = vsel %vm313_vm3, %v1228_v29, 0  ;;  %v405_v33 = vadd.f32 %v404_v23, %v332_v27  ;;  %v1234_v34 = vsel %vm313_vm3, %v1227_v30, 0 }
 0x12a   : > { %1262 = vmatpush.bf16.msrb.mxu1 %v1237_v32  ;;  %1249 = vmatpush.bf16.msrb.mxu0 %v1234_v34 }
 0x12b   : > { %1403 = vmatmul.msk.bf16.vlgmr.msra.gmra.mxu0 %vm309_vm4, %v1400_v17 }
 0x12c   : > { %1406 = vmatmul.msk.bf16.vlgmr.msra.gmra.mxu2 %vm309_vm4, %v1404_v31 }
 0x12d   : > { %1405 = vmatmul.msk.bf16.vlgmr.msra.gmra.mxu1 %vm309_vm4, %v1404_v31  ;;  %1407 = vmatmul.msk.bf16.vlgmr.msra.gmra.mxu3 %vm309_vm4, %v1404_v31 }
 0x12f   : > { %v358_v38 = vpop.f32.mrf.mxu2 }
 0x130   : > { %v334_v39 = vpop.f32.mrf.mxu0  ;;  %v347_v40 = vpop.f32.mrf.mxu1 }
 0x137   : > { %v360_v41 = vpop.f32.mrf.mxu2 }
 0x138   : > { %v417_v42 = vpop.f32.mrf.mxu0 }
 0x139   : > { %v418_v44 = vadd.f32 %v417_v42, %v345_v28 }
 0x13a   : > { %v430_v45 = vpop.f32.mrf.mxu1 }
 0x13b   : > { %v431_v46 = vadd.f32 %v430_v45, %v358_v38  ;;  %1409 = vmatmul.msk.bf16.vlgmr.msrb.gmra.mxu0 %vm309_vm4, %v1408_v43 }
 0x13c   : > { %1411 = vmatmul.msk.bf16.vlgmr.msrb.gmra.mxu2 %vm309_vm4, %v1408_v43 }
 0x13d   : > { %1410 = vmatmul.msk.bf16.vlgmr.msrb.gmra.mxu1 %vm309_vm4, %v1408_v43 }
 0x13f   : > { %v478_v47 = vpop.f32.mrf.mxu2 }
 0x140   : > { %v508_v48 = vadd.f32 %v478_v47, %v405_v33  ;;  %v491_v49 = vpop.f32.mrf.mxu3  ;;  %v419_v50 = vpop.f32.mrf.mxu0 }
 0x141   : > { %v509_v51 = vadd.f32 %v491_v49, %v418_v44 }
 0x142   : > { %v432_v52 = vpop.f32.mrf.mxu1 }
 0x147   : > { %v480_v53 = vpop.f32.mrf.mxu2 }
 0x148   : > { %v493_v54 = vpop.f32.mrf.mxu3  ;;  %v504_v55 = vpop.f32.mrf.mxu0 }
 0x149   : > { %v510_v56 = vadd.f32 %v504_v55, %v431_v46 }
 0x14a   : > { %v555_v57 = vpop.f32.mrf.mxu1 }
 0x14b   : > { %v585_v58 = vadd.f32 %v555_v57, %v508_v48 }
 0x14f   : > { %v568_v59 = vpop.f32.mrf.mxu2 }
 0x150   : > { %v586_v60 = vadd.f32 %v568_v59, %v509_v51  ;;  %v581_v61 = vpop.f32.mrf.mxu3  ;;  %v506_v62 = vpop.f32.mrf.mxu0 }
 0x151   : > { %v587_v63 = vadd.f32 %v581_v61, %v510_v56 }
 0x152   : > { %v557_v0 = vpop.f32.mrf.mxu1 }
 0x157   : > { %v570_v2 = vpop.f32.mrf.mxu2 }
 0x158   : > { %v583_v3 = vpop.f32.mrf.mxu3  ;;  %v632_v4 = vpop.f32.mrf.mxu0 }
 0x159   : > { %v662_v5 = vadd.f32 %v632_v4, %v585_v58 }
 0x15a   : > { %v645_v6 = vpop.f32.mrf.mxu1 }
 0x15b   : > { %v663_v7 = vadd.f32 %v645_v6, %v586_v60 }
 0x15f   : > { %v658_v8 = vpop.f32.mrf.mxu2 }
 0x160   : > { %v664_v9 = vadd.f32 %v658_v8, %v587_v63  ;;  %v709_v10 = vpop.f32.mrf.mxu3  ;;  %v634_v11 = vpop.f32.mrf.mxu0 }
 0x161   : > { %v739_v12 = vadd.f32 %v709_v10, %v662_v5 }
 0x162   : > { %v647_v13 = vpop.f32.mrf.mxu1 }
 0x167   : > { %v660_v14 = vpop.f32.mrf.mxu2 }
 0x168   : > { %v711_v15 = vpop.f32.mrf.mxu3  ;;  %v722_v16 = vpop.f32.mrf.mxu0 }
 0x169   : > { %v740_v17 = vadd.f32 %v722_v16, %v663_v7 }
 0x16a   : > { %v735_v18 = vpop.f32.mrf.mxu1 }
 0x16b   : > { %v741_v19 = vadd.f32 %v735_v18, %v664_v9 }
 0x16f   : > { %v786_v20 = vpop.f32.mrf.mxu2 }
 0x170   : > { %v799_v21 = vpop.f32.mrf.mxu3  ;;  %v724_v22 = vpop.f32.mrf.mxu0  ;;  %v816_v52 = vadd.f32 %v786_v20, %v739_v12 }
 0x171   : > { %v817_v53 = vadd.f32 %v799_v21, %v740_v17 }
 0x172   : > { %v737_v23 = vpop.f32.mrf.mxu1 }
 0x177   : > { %v788_v24 = vpop.f32.mrf.mxu2 }
 0x178   : > { %v801_v25 = vpop.f32.mrf.mxu3  ;;  %v812_v26 = vpop.f32.mrf.mxu0 }
 0x179   : > { %v818_v63 = vadd.f32 %v812_v26, %v741_v19 }
 0x17a   : > { %v863_v27 = vpop.f32.mrf.mxu1 }
 0x17b   : > { %v893_v54 = vadd.f32 %v863_v27, %v816_v52 }
 0x17e   : > { %v1287_v7 = vpop.permute.xlu1 %1286 }
 0x17f   : > { %v876_v28 = vpop.f32.mrf.mxu2 }
 0x180   : > { %v889_v29 = vpop.f32.mrf.mxu3  ;;  %v814_v30 = vpop.f32.mrf.mxu0  ;;  %v894_v58 = vadd.f32 %v876_v28, %v817_v53 }
 0x181   : > { %v895_v3 = vadd.f32 %v889_v29, %v818_v63 }
 0x182   : > { %v865_v31 = vpop.f32.mrf.mxu1 }
 0x187   : > { %v878_v32 = vpop.f32.mrf.mxu2 }
 0x188   : > { %v891_v33 = vpop.f32.mrf.mxu3  ;;  %v940_v34 = vpop.f32.mrf.mxu0 }
 0x189   : > { %v970_v59 = vadd.f32 %v940_v34, %v893_v54 }
 0x18a   : > { %v953_v35 = vpop.f32.mrf.mxu1 }
 0x18b   : > { %v971_v61 = vadd.f32 %v953_v35, %v894_v58 }
 0x18f   : > { %v966_v36 = vpop.f32.mrf.mxu2 }
 0x190   : > { %v1017_v37 = vpop.f32.mrf.mxu3  ;;  %v942_v38 = vpop.f32.mrf.mxu0  ;;  %v972_v8 = vadd.f32 %v966_v36, %v895_v3 }
 0x191   : > { %v1047_v62 = vadd.f32 %v1017_v37, %v970_v59 }
 0x192   : > { %v955_v39 = vpop.f32.mrf.mxu1 }
 0x197   : > { %v968_v40 = vpop.f32.mrf.mxu2 }
 0x198   : > { %v1019_v41 = vpop.f32.mrf.mxu3  ;;  %v1030_v42 = vpop.f32.mrf.mxu0 }
 0x199   : > { %v1048_v0 = vadd.f32 %v1030_v42, %v971_v61 }
 0x19a   : > { %v1043_v43 = vpop.f32.mrf.mxu1 }
 0x19b   : > { %v1049_v13 = vadd.f32 %v1043_v43, %v972_v8 }
 0x19f   : > { %v1094_v44 = vpop.f32.mrf.mxu2 }
 0x1a0   : > { %v1107_v45 = vpop.f32.mrf.mxu3  ;;  %v1032_v46 = vpop.f32.mrf.mxu0  ;;  %v1124_v2 = vadd.f32 %v1094_v44, %v1047_v62 }
 0x1a1   : > { %v1125_v4 = vadd.f32 %v1107_v45, %v1048_v0 }
 0x1a2   : > { %v1045_v47 = vpop.f32.mrf.mxu1 }
 0x1a7   : > { %v1096_v48 = vpop.f32.mrf.mxu2 }
 0x1a8   : > { %v1109_v49 = vpop.f32.mrf.mxu3  ;;  %v1120_v50 = vpop.f32.mrf.mxu0 }
 0x1a9   : > { %v1126_v17 = vadd.f32 %v1120_v50, %v1049_v13 }
 0x1aa   : > { %v1171_v51 = vpop.f32.mrf.mxu1 }
 0x1ab   : > { %v1201_v5 = vadd.f32 %v1171_v51, %v1124_v2 }
 0x1af   : > { %v1184_v55 = vpop.f32.mrf.mxu2 }
 0x1b0   : > { %v1197_v56 = vpop.f32.mrf.mxu3  ;;  %v1122_v57 = vpop.f32.mrf.mxu0  ;;  %v1202_v11 = vadd.f32 %v1184_v55, %v1125_v4 }
 0x1b1   : > { %v1203_v19 = vadd.f32 %v1197_v56, %v1126_v17 }
 0x1b2   : > { %v1173_v60 = vpop.f32.mrf.mxu1 }
 0x1b7   : > { %v1186_v6 = vpop.f32.mrf.mxu2 }
 0x1b8   : > { %v1251_v9 = vpop.f32.mrf.mxu0  ;;  %v1199_v10 = vpop.f32.mrf.mxu3 }
 0x1b9   : > { %v1281_v12 = vadd.f32 %v1251_v9, %v1201_v5 }
 0x1ba   : > { %v1264_v14 = vpop.f32.mrf.mxu1 }
 0x1bb   : > { %v1282_v15 = vadd.f32 %v1264_v14, %v1202_v11  ;;  %v1289_v16 = vadd.f32 %v1287_v7, %v1281_v12 }
 0x1bd   : > { %v1290_v18 = vadd.f32 %v1287_v7, %v1282_v15  ;;  %1292 = vst [vmem:[%s176_s15] sm:$0xff] %v1289_v16 }
 0x1bf   : > { %1293 = vst [vmem:[%s176_s15 + $0x8] sm:$0xff] %v1290_v18  ;;  %v1277_v20 = vpop.f32.mrf.mxu2 }
 0x1c0   : > { %v1283_v21 = vadd.f32 %v1277_v20, %v1203_v19  ;;  %v1253_v22 = vpop.f32.mrf.mxu0 }
 0x1c2   : > { %v1291_v23 = vadd.f32 %v1287_v7, %v1283_v21  ;;  %v1266_v24 = vpop.f32.mrf.mxu1 }
 0x1c4   : > { %1294 = vst [vmem:[%s176_s15 + $0x10] sm:$0xff] %v1291_v23 }
 0x1c7   : > { %v1279_v25 = vpop.f32.mrf.mxu2 }
 0x1c8 PF: > { %s19_s17 = sadd.s32 1, %s1446_s17  }
 0x1c9   : > { %p16_p4 = scmp.ge.s32.totalorder %s19_s17, 4  }
 0x1cb   :  { %18 = sbr.rel (!%p16_p4) target bundleno = 3 (0x3), region = 82 }

</bundles_post_ra>
